<compile_context>
chip_gen: v7x
topology: tpu7x:2x2x1
jax: 0.10.0
libtpu: 0.0.40
codegen_flags: <defaults>
</compile_context>

<pallas_src>
import functools

import jax
import jax.numpy as jnp
from jax.experimental import pallas as pl
from jax.experimental.pallas import tpu as pltpu


def _cdiv(a, b):
    return -(-a // b)


def _round_up(a, b):
    return _cdiv(a, b) * b


def _ce_kernel(pred_ref, tgt_ref, out_ref, m_ref, l_ref, t_ref, acc_ref, *, tile_c):
    s = pl.program_id(1)            # row-tile step inside this chunk
    c = pl.program_id(2)            # class-tile step (online logsumexp axis)
    n_s = pl.num_programs(1)
    n_c = pl.num_programs(2)

    @pl.when(jnp.logical_and(s == 0, c == 0))
    def _():
        acc_ref[...] = jnp.zeros_like(acc_ref)

    @pl.when(c == 0)
    def _():
        m_ref[...] = jnp.full_like(m_ref, -jnp.inf)
        l_ref[...] = jnp.zeros_like(l_ref)
        t_ref[...] = jnp.zeros_like(t_ref)

    logits = pred_ref[...].astype(jnp.float32)              # (TN, TC)
    tgt = tgt_ref[...]                                       # (TN, 1) int32

    # Online (flash-style) logsumexp update over the class tiles.
    blk_max = jnp.max(logits, axis=-1, keepdims=True)        # (TN, 1)
    m_prev = m_ref[...]
    m_new = jnp.maximum(m_prev, blk_max)
    l_ref[...] = l_ref[...] * jnp.exp(m_prev - m_new) + jnp.sum(
        jnp.exp(logits - m_new), axis=-1, keepdims=True)
    m_ref[...] = m_new

    # Target-logit gather via one-hot; iota is only (1, TC) and broadcast.
    class_ids = c * tile_c + jax.lax.broadcasted_iota(jnp.int32, (1, tile_c), 1)
    t_ref[...] += jnp.sum(jnp.where(class_ids == tgt, logits, 0.0),
                          axis=-1, keepdims=True)

    @pl.when(c == n_c - 1)
    def _():
        valid = tgt >= 0                                     # negative => ignored / padding
        row_loss = m_ref[...] + jnp.log(l_ref[...]) - t_ref[...]
        acc_ref[...] += jnp.where(valid, row_loss, 0.0)

    @pl.when(jnp.logical_and(s == n_s - 1, c == n_c - 1))
    def _():
        # Single cross-sublane reduce + store per chunk (aligned (8,128) block).
        chunk_sum = jnp.sum(acc_ref[...])
        out_ref[...] = jnp.full((1, 8, 128), chunk_sum, dtype=jnp.float32)


def tokens_loss(prediction: jax.Array, target: jax.Array, *,
                num_chunks: int = 2,
                vmem_budget_bytes: int = 32 * 1024 * 1024,
                max_tile_c: int = 2048) -> jax.Array:
    """Mean cross-entropy over all leading dims, matching TokensLoss.forward."""
    num_classes = prediction.shape[-1]
    pred2d = prediction.reshape(-1, num_classes)          # keep caller dtype (bf16 ok)
    tgt1d = target.reshape(-1).astype(jnp.int32)
    n = pred2d.shape[0]

    itemsize = pred2d.dtype.itemsize
    row_align = {4: 8, 2: 16, 1: 32}.get(itemsize, 8)

    # Class tile: lane-dense multiple of 128, capped so row tiles stay large.
    tile_c = min(_round_up(num_classes, 128), max_tile_c)
    c_pad = _round_up(num_classes, tile_c)
    c_steps = c_pad // tile_c

    # Row tile sized against the double-buffered pred-block VMEM budget.
    tile_n = (vmem_budget_bytes // (2 * tile_c * itemsize)) // row_align * row_align
    tile_n = max(row_align, min(tile_n, 1024))
    rows_per_chunk = _cdiv(n, num_chunks)
    tile_n = min(tile_n, _round_up(rows_per_chunk, row_align))
    steps = _cdiv(rows_per_chunk, tile_n)
    n_pad = num_chunks * steps * tile_n

    # Pad class axis with a huge negative (exp -> 0, targets never index it);
    # pad extra rows with ignored targets so they drop out of sum and divisor.
    if c_pad != num_classes:
        neg = float(jnp.finfo(pred2d.dtype).min) * 0.5
        pred2d = jnp.pad(pred2d, ((0, 0), (0, c_pad - num_classes)),
                         constant_values=neg)
    if n_pad != n:
        pred2d = jnp.pad(pred2d, ((0, n_pad - n), (0, 0)))
        tgt1d = jnp.pad(tgt1d, (0, n_pad - n), constant_values=-1)
    tgt2d = tgt1d.reshape(-1, 1)

    kernel = functools.partial(_ce_kernel, tile_c=tile_c)

    vmem_needed = (2 * tile_n * tile_c * itemsize    # double-buffered pred tiles
                   + 2 * tile_n * 4                  # double-buffered target tiles
                   + 4 * tile_n * 4                  # m / l / t / acc scratch
                   + 2 * 8 * 128 * 4                 # output block
                   + (1 << 16))
    compiler_params = pltpu.CompilerParams(
        dimension_semantics=("parallel", "arbitrary", "arbitrary"),
        vmem_limit_bytes=int(min(vmem_needed + (4 << 20), 96 * 1024 * 1024)),
    )
    cost = pl.CostEstimate(
        flops=6 * n_pad * c_pad,
        transcendentals=n_pad * c_pad,
        bytes_accessed=n_pad * c_pad * itemsize + n_pad * 4 + num_chunks * 8 * 128 * 4,
    )

    out = pl.pallas_call(
        kernel,
        out_shape=jax.ShapeDtypeStruct((num_chunks, 8, 128), jnp.float32),
        grid_spec=pltpu.PrefetchScalarGridSpec(
            num_scalar_prefetch=0,
            grid=(num_chunks, steps, c_steps),
            in_specs=[
                pl.BlockSpec((tile_n, tile_c), lambda p, s, c: (p * steps + s, c)),
                pl.BlockSpec((tile_n, 1), lambda p, s, c: (p * steps + s, 0)),
            ],
            out_specs=pl.BlockSpec((1, 8, 128), lambda p, s, c: (p, 0, 0)),
            scratch_shapes=[pltpu.VMEM((tile_n, 1), jnp.float32)] * 4,
        ),
        compiler_params=compiler_params,
        cost_estimate=cost,
    )(pred2d, tgt2d)

    partials = out[:, 0, 0]                                   # one partial sum per chunk
    valid_count = jnp.sum(target.reshape(-1).astype(jnp.int32) >= 0)
    return jnp.sum(partials) / valid_count.astype(jnp.float32)


if __name__ == "__main__":
    key = jax.random.PRNGKey(0)
    k_pred, k_tgt = jax.random.split(key)

    seq, batch, vocab = 8, 2, 32
    prediction = jax.random.normal(k_pred, (seq, batch, vocab), dtype=jnp.float32)
    target = jax.random.randint(k_tgt, (seq, batch), 0, vocab, dtype=jnp.int32)

    loss = tokens_loss(prediction, target)
    jax.block_until_ready(loss)

    # Reference (same math as nn.CrossEntropyLoss, mean reduction).
    p2 = prediction.reshape(-1, vocab)
    t2 = target.reshape(-1)
    lse = jax.scipy.special.logsumexp(p2, axis=-1)
    ref = jnp.mean(lse - p2[jnp.arange(p2.shape[0]), t2])
    assert jnp.allclose(loss, ref, atol=1e-5, rtol=1e-5), (loss, ref)

    # bf16 inputs flow through the DMA without a wrapper upcast.
    pred_bf16 = prediction.astype(jnp.bfloat16)
    loss_bf16 = tokens_loss(pred_bf16, target)
    jax.block_until_ready(loss_bf16)
    p2b = pred_bf16.reshape(-1, vocab).astype(jnp.float32)
    lse_b = jax.scipy.special.logsumexp(p2b, axis=-1)
    ref_b = jnp.mean(lse_b - p2b[jnp.arange(p2b.shape[0]), t2])
    assert jnp.allclose(loss_bf16, ref_b, atol=1e-3, rtol=1e-3), (loss_bf16, ref_b)

    print("KERNEL_OK")
</pallas_src>

<mosaic_0001>
module attributes {stable_mosaic.version = 11 : i64} {
  func.func @_ce_kernel(%arg0: i32, %arg1: i32, %arg2: i32, %arg3: memref<8x128xf32, #tpu.memory_space<vmem>>, %arg4: memref<8x1xi32, #tpu.memory_space<vmem>>, %arg5: memref<1x8x128xf32, #tpu.memory_space<vmem>>, %arg6: memref<8x1xf32, #tpu.memory_space<vmem>>, %arg7: memref<8x1xf32, #tpu.memory_space<vmem>>, %arg8: memref<8x1xf32, #tpu.memory_space<vmem>>, %arg9: memref<8x1xf32, #tpu.memory_space<vmem>>) attributes {dimension_semantics = [#tpu.dimension_semantics<parallel>, #tpu.dimension_semantics<arbitrary>, #tpu.dimension_semantics<arbitrary>], iteration_bounds = array<i64: 2, 1, 1>, scalar_prefetch = 0 : i64, scratch_operands = 4 : i64, tpu.core_type = #tpu.core_type<tc>, window_params = [{transform_indices = @transform_0, window_bounds = array<i64: 8, 128>}, {transform_indices = @transform_1, window_bounds = array<i64: 8, 1>}, {transform_indices = @transform_2, window_bounds = array<i64: 1, 8, 128>}]} {
    %c0_i32 = arith.constant 0 : i32
    %0 = arith.cmpi eq, %arg1, %c0_i32 : i32
    %c0_i32_0 = arith.constant 0 : i32
    %1 = arith.cmpi eq, %arg2, %c0_i32_0 : i32
    %2 = arith.andi %0, %1 : i1
    %3 = arith.extui %2 : i1 to i32
    %c0_i32_1 = arith.constant 0 : i32
    %4 = arith.cmpi ne, %3, %c0_i32_1 : i32
    scf.if %4 {
      %cst_27 = arith.constant 0.000000e+00 : f32
      %48 = vector.broadcast %cst_27 : f32 to vector<8x1xf32>
      %c0_28 = arith.constant 0 : index
      %c0_29 = arith.constant 0 : index
      %49 = vector.load %arg9[%c0_28, %c0_29] : memref<8x1xf32, #tpu.memory_space<vmem>>, vector<8x1xf32>
      tpu.vector_store %arg9[%c0_28, %c0_29], %48 {strides = array<i32>} : memref<8x1xf32, #tpu.memory_space<vmem>>, vector<8x1xf32>,
    } else {
    }
    %c0_i32_2 = arith.constant 0 : i32
    %5 = arith.cmpi eq, %arg2, %c0_i32_2 : i32
    %6 = arith.extui %5 : i1 to i32
    %c0_i32_3 = arith.constant 0 : i32
    %7 = arith.cmpi ne, %6, %c0_i32_3 : i32
    scf.if %7 {
      %cst_27 = arith.constant 0xFF800000 : f32
      %48 = vector.broadcast %cst_27 : f32 to vector<8x1xf32>
      %c0_28 = arith.constant 0 : index
      %c0_29 = arith.constant 0 : index
      %49 = vector.load %arg6[%c0_28, %c0_29] : memref<8x1xf32, #tpu.memory_space<vmem>>, vector<8x1xf32>
      tpu.vector_store %arg6[%c0_28, %c0_29], %48 {strides = array<i32>} : memref<8x1xf32, #tpu.memory_space<vmem>>, vector<8x1xf32>,
      %cst_30 = arith.constant 0.000000e+00 : f32
      %50 = vector.broadcast %cst_30 : f32 to vector<8x1xf32>
      %c0_31 = arith.constant 0 : index
      %c0_32 = arith.constant 0 : index
      %51 = vector.load %arg7[%c0_31, %c0_32] : memref<8x1xf32, #tpu.memory_space<vmem>>, vector<8x1xf32>
      tpu.vector_store %arg7[%c0_31, %c0_32], %50 {strides = array<i32>} : memref<8x1xf32, #tpu.memory_space<vmem>>, vector<8x1xf32>,
      %cst_33 = arith.constant 0.000000e+00 : f32
      %52 = vector.broadcast %cst_33 : f32 to vector<8x1xf32>
      %c0_34 = arith.constant 0 : index
      %c0_35 = arith.constant 0 : index
      %53 = vector.load %arg8[%c0_34, %c0_35] : memref<8x1xf32, #tpu.memory_space<vmem>>, vector<8x1xf32>
      tpu.vector_store %arg8[%c0_34, %c0_35], %52 {strides = array<i32>} : memref<8x1xf32, #tpu.memory_space<vmem>>, vector<8x1xf32>,
    } else {
    }
    %c0 = arith.constant 0 : index
    %c0_4 = arith.constant 0 : index
    %8 = vector.load %arg3[%c0, %c0_4] : memref<8x128xf32, #tpu.memory_space<vmem>>, vector<8x128xf32>
    %c0_5 = arith.constant 0 : index
    %c0_6 = arith.constant 0 : index
    %9 = vector.load %arg4[%c0_5, %c0_6] : memref<8x1xi32, #tpu.memory_space<vmem>>, vector<8x1xi32>
    %cst = arith.constant dense<0xFF800000> : vector<8xf32>
    %10 = vector.multi_reduction <maximumf>, %8, %cst [1] : vector<8x128xf32> to vector<8xf32>
    %11 = vector.shape_cast %10 : vector<8xf32> to vector<8x1xf32>
    %c0_7 = arith.constant 0 : index
    %c0_8 = arith.constant 0 : index
    %12 = vector.load %arg6[%c0_7, %c0_8] : memref<8x1xf32, #tpu.memory_space<vmem>>, vector<8x1xf32>
    %13 = arith.maximumf %12, %11 : vector<8x1xf32>
    %c0_9 = arith.constant 0 : index
    %c0_10 = arith.constant 0 : index
    %14 = vector.load %arg7[%c0_9, %c0_10] : memref<8x1xf32, #tpu.memory_space<vmem>>, vector<8x1xf32>
    %15 = arith.subf %12, %13 : vector<8x1xf32>
    %16 = math.exp %15 : vector<8x1xf32>
    %17 = arith.mulf %14, %16 : vector<8x1xf32>
    %18 = vector.broadcast %13 : vector<8x1xf32> to vector<8x128xf32>
    %19 = arith.subf %8, %18 : vector<8x128xf32>
    %20 = math.exp %19 : vector<8x128xf32>
    %cst_11 = arith.constant dense<0.000000e+00> : vector<8xf32>
    %21 = vector.multi_reduction <add>, %20, %cst_11 [1] : vector<8x128xf32> to vector<8xf32>
    %22 = vector.shape_cast %21 : vector<8xf32> to vector<8x1xf32>
    %23 = arith.addf %17, %22 : vector<8x1xf32>
    %c0_12 = arith.constant 0 : index
    %c0_13 = arith.constant 0 : index
    %24 = vector.load %arg7[%c0_12, %c0_13] : memref<8x1xf32, #tpu.memory_space<vmem>>, vector<8x1xf32>
    tpu.vector_store %arg7[%c0_12, %c0_13], %23 {strides = array<i32>} : memref<8x1xf32, #tpu.memory_space<vmem>>, vector<8x1xf32>,
    %c0_14 = arith.constant 0 : index
    %c0_15 = arith.constant 0 : index
    %25 = vector.load %arg6[%c0_14, %c0_15] : memref<8x1xf32, #tpu.memory_space<vmem>>, vector<8x1xf32>
    tpu.vector_store %arg6[%c0_14, %c0_15], %13 {strides = array<i32>} : memref<8x1xf32, #tpu.memory_space<vmem>>, vector<8x1xf32>,
    %c128_i32 = arith.constant 128 : i32
    %26 = arith.muli %arg2, %c128_i32 : i32
    %27 = tpu.iota {dimensions = array<i32: 1>} : vector<1x128xi32>
    %28 = vector.broadcast %26 : i32 to vector<1x128xi32>
    %29 = arith.addi %28, %27 : vector<1x128xi32>
    %c0_16 = arith.constant 0 : index
    %c0_17 = arith.constant 0 : index
    %30 = vector.load %arg8[%c0_16, %c0_17] : memref<8x1xf32, #tpu.memory_space<vmem>>, vector<8x1xf32>
    %31 = vector.broadcast %29 : vector<1x128xi32> to vector<8x128xi32>
    %32 = vector.broadcast %9 : vector<8x1xi32> to vector<8x128xi32>
    %33 = arith.cmpi eq, %31, %32 : vector<8x128xi32>
    %cst_18 = arith.constant 0.000000e+00 : f32
    %34 = vector.broadcast %cst_18 : f32 to vector<8x128xf32>
    %35 = arith.select %33, %8, %34 : vector<8x128xi1>, vector<8x128xf32>
    %cst_19 = arith.constant dense<0.000000e+00> : vector<8xf32>
    %36 = vector.multi_reduction <add>, %35, %cst_19 [1] : vector<8x128xf32> to vector<8xf32>
    %37 = vector.shape_cast %36 : vector<8xf32> to vector<8x1xf32>
    %38 = arith.addf %30, %37 : vector<8x1xf32>
    %c0_20 = arith.constant 0 : index
    %c0_21 = arith.constant 0 : index
    %39 = vector.load %arg8[%c0_20, %c0_21] : memref<8x1xf32, #tpu.memory_space<vmem>>, vector<8x1xf32>
    tpu.vector_store %arg8[%c0_20, %c0_21], %38 {strides = array<i32>} : memref<8x1xf32, #tpu.memory_space<vmem>>, vector<8x1xf32>,
    %c0_i32_22 = arith.constant 0 : i32
    %40 = arith.cmpi eq, %arg2, %c0_i32_22 : i32
    %41 = arith.extui %40 : i1 to i32
    %c0_i32_23 = arith.constant 0 : i32
    %42 = arith.cmpi ne, %41, %c0_i32_23 : i32
    scf.if %42 {
      %c0_i32_27 = arith.constant 0 : i32
      %48 = vector.broadcast %c0_i32_27 : i32 to vector<8x1xi32>
      %49 = arith.cmpi sge, %9, %48 : vector<8x1xi32>
      %c0_28 = arith.constant 0 : index
      %c0_29 = arith.constant 0 : index
      %50 = vector.load %arg6[%c0_28, %c0_29] : memref<8x1xf32, #tpu.memory_space<vmem>>, vector<8x1xf32>
      %c0_30 = arith.constant 0 : index
      %c0_31 = arith.constant 0 : index
      %51 = vector.load %arg7[%c0_30, %c0_31] : memref<8x1xf32, #tpu.memory_space<vmem>>, vector<8x1xf32>
      %52 = math.log %51 : vector<8x1xf32>
      %53 = arith.addf %50, %52 : vector<8x1xf32>
      %c0_32 = arith.constant 0 : index
      %c0_33 = arith.constant 0 : index
      %54 = vector.load %arg8[%c0_32, %c0_33] : memref<8x1xf32, #tpu.memory_space<vmem>>, vector<8x1xf32>
      %55 = arith.subf %53, %54 : vector<8x1xf32>
      %c0_34 = arith.constant 0 : index
      %c0_35 = arith.constant 0 : index
      %56 = vector.load %arg9[%c0_34, %c0_35] : memref<8x1xf32, #tpu.memory_space<vmem>>, vector<8x1xf32>
      %cst_36 = arith.constant 0.000000e+00 : f32
      %57 = vector.broadcast %cst_36 : f32 to vector<8x1xf32>
      %58 = arith.select %49, %55, %57 : vector<8x1xi1>, vector<8x1xf32>
      %59 = arith.addf %56, %58 : vector<8x1xf32>
      %c0_37 = arith.constant 0 : index
      %c0_38 = arith.constant 0 : index
      %60 = vector.load %arg9[%c0_37, %c0_38] : memref<8x1xf32, #tpu.memory_space<vmem>>, vector<8x1xf32>
      tpu.vector_store %arg9[%c0_37, %c0_38], %59 {strides = array<i32>} : memref<8x1xf32, #tpu.memory_space<vmem>>, vector<8x1xf32>,
    } else {
    }
    %c0_i32_24 = arith.constant 0 : i32
    %43 = arith.cmpi eq, %arg1, %c0_i32_24 : i32
    %c0_i32_25 = arith.constant 0 : i32
    %44 = arith.cmpi eq, %arg2, %c0_i32_25 : i32
    %45 = arith.andi %43, %44 : i1
    %46 = arith.extui %45 : i1 to i32
    %c0_i32_26 = arith.constant 0 : i32
    %47 = arith.cmpi ne, %46, %c0_i32_26 : i32
    scf.if %47 {
      %c0_27 = arith.constant 0 : index
      %c0_28 = arith.constant 0 : index
      %48 = vector.load %arg9[%c0_27, %c0_28] : memref<8x1xf32, #tpu.memory_space<vmem>>, vector<8x1xf32>
      %49 = vector.shape_cast %48 : vector<8x1xf32> to vector<1x8x1xf32>
      %cst_29 = arith.constant dense<0.000000e+00> : vector<1xf32>
      %50 = vector.multi_reduction <add>, %49, %cst_29 [1, 2] : vector<1x8x1xf32> to vector<1xf32>
      %51 = vector.shape_cast %50 : vector<1xf32> to vector<1x1x1xf32>
      %52 = vector.extract %51[0, 0, 0] : f32 from vector<1x1x1xf32>
      %53 = vector.broadcast %52 : f32 to vector<1x8x128xf32>
      %c0_30 = arith.constant 0 : index
      %c0_31 = arith.constant 0 : index
      %c0_32 = arith.constant 0 : index
      %54 = vector.load %arg5[%c0_30, %c0_31, %c0_32] : memref<1x8x128xf32, #tpu.memory_space<vmem>>, vector<1x8x128xf32>
      tpu.vector_store %arg5[%c0_30, %c0_31, %c0_32], %53 {strides = array<i32>} : memref<1x8x128xf32, #tpu.memory_space<vmem>>, vector<1x8x128xf32>,
    } else {
    }
    return
  }
  func.func @transform_0(%arg0: i32, %arg1: i32, %arg2: i32) -> (i32, i32) {
    %c1_i32 = arith.constant 1 : i32
    %0 = arith.muli %arg0, %c1_i32 : i32
    %1 = arith.addi %0, %arg1 : i32
    %c0_i32 = arith.constant 0 : i32
    return %1, %arg2 : i32, i32
  }
  func.func @transform_1(%arg0: i32, %arg1: i32, %arg2: i32) -> (i32, i32) {
    %c1_i32 = arith.constant 1 : i32
    %0 = arith.muli %arg0, %c1_i32 : i32
    %1 = arith.addi %0, %arg1 : i32
    %c0_i32 = arith.constant 0 : i32
    %c0_i32_0 = arith.constant 0 : i32
    return %1, %c0_i32 : i32, i32
  }
  func.func @transform_2(%arg0: i32, %arg1: i32, %arg2: i32) -> (i32, i32, i32) {
    %c0_i32 = arith.constant 0 : i32
    %c0_i32_0 = arith.constant 0 : i32
    %c0_i32_1 = arith.constant 0 : i32
    return %arg0, %c0_i32, %c0_i32_0 : i32, i32, i32
  }
}

</mosaic_0001>

<bundles_post_ra>
// kernel: tpu_custom_call.1
= control target key start
LH: loop header
LB: loop body
LE: loop exit
PB: predicated region body
PF: predicated region fallthrough
CT: control target
= control target key end

     0   :  { %7 = vsyncpa [#allocation7], 0  ;;  %s687_s0 = inlined_call_operand.vmem [shape: f32[16,128], index: 0, kind: input, shape index: {}]   ;;  %s688_s1 = inlined_call_operand.vmem [shape: s32[16,1], index: 1, kind: input, shape index: {}]   ;;  %s689_s2 = inlined_call_operand.hbm [shape: f32[2,8,128], index: 2, kind: output, shape index: {}]  }
   0x1   :  { %9 = vsyncpa [#allocation7 + $0x1], 0  ;;  %s563_s9 = smov 0   ;;  %s565_s10 = smov 0  }
   0x2   :  { %s567_s11 = smov 0   ;;  %s569_s12 = smov 0  }
   0x3   :  { %s571_s13 = smov 0   ;;  %s573_s14 = smov 0  }
   0x4 LB: > { %s384_s15 = sadd.s32 4294967295, %s542_s14   ;;  %s385_s16 = sadd.s32 4294967294, %s542_s14   ;;  %s542_s14 = sphi %s573_s14, %s15_s14   ;;  %s538_s13 = sphi %s571_s13, %s696_s13   ;;  %s534_s12 = sphi %s569_s12, %s695_s12   ;;  %s530_s11 = sphi %s567_s11, %s694_s11   ;;  %s526_s10 = sphi %s565_s10, %s693_s10   ;;  %s522_s9 = sphi %s563_s9, %s692_s9  }
   0x5   : > { %s34_s17 = sadd.s32 1, %s538_s13  ;;  %s99_s18 = sadd.s32 1, %s530_s11 }
   0x6   : > { %p36_p0 = scmp.ge.s32.totalorder %s34_s17, 2  ;;  %p109_p1 = scmp.ne.s32.totalorder %s530_s11, %s526_s10 }
   0x7   : > { %p110_p2 = scmp.eq.s32.totalorder %s384_s15, 1  ;;  %p115_p3 = scmp.ne.s32.totalorder %s526_s10, %s522_s9 }
   0x8   : > { %s698_s17 = smov (%p36_p0, %s34_s17), 0  ;;  %p116_p5 = scmp.eq.s32.totalorder %s385_s16, 1 }
   0x9   : > { %p603_p4 = por %p110_p2, %p109_p1  ;;  %s96_s20 = ssub.s32 %s538_s13, %s698_s17 }
   0xa   : > { %p388_p6 = scmp.ge.s32.totalorder %s542_s14, 1  ;;  %p97_p7 = scmp.eq.s32.totalorder %s96_s20, 0 }
   0xb   : > { %p610_p8 = por %p116_p5, %p115_p3  ;;  %p155_p9 = scmp.lt.s32.totalorder %s542_s14, 3 }
   0xc   : > { %s616_s22 = scalar_select %p97_p7, %s530_s11, %s99_s18  }
   0xd   : > { %p156_p10 = pnand %p388_p6, %p155_p9 }
   0xe   : > { %p186_p11 = scmp.lt.s32.totalorder (!%p156_p10), %s534_s12, 1  ;;  %vm206_vm0 = vcmask (!%p156_p10), 7168   ;;  %v544_v0 = vmov (!%p156_p10), -inf   ;;  %v545_v2 = vmov (!%p156_p10), 0   ;;  %v546_v3 = vmov (!%p156_p10), 0.0   ;;  %s182_s3 = sand.u32 (!%p156_p10), 1, %s526_s10  }
   0xf   : > { %159 = sbr.rel (%p156_p10) target bundleno = 714 (0x2ca), region = 28  ;;  %212 = vst.msk [vmem:[#allocation2] sm:$0xff] (!%p156_p10), %vm206_vm0, %v544_v0  ;;  %456 = vset.pattern.permute.xlu0 (!%p156_p10), %v545_v2  ;;  %457 = vset.pattern.permute.xlu1 (!%p156_p10), %v545_v2  ;;  %207 = vst.msk [vmem:[#allocation5] sm:$0xff] (!%p156_p10), %vm206_vm0, %v546_v3  ;;  %v241_v12 = vlaneseq (!%p156_p10)  ;;  %s389_s4 = sshll.u32 (!%p156_p10), %s182_s3, 3 }
  0x10   : > { %213 = vst.msk [vmem:[#allocation3] sm:$0xff] (!%p156_p10), %vm206_vm0, %v546_v3  ;;  %214 = vst.msk [vmem:[#allocation4] sm:$0xff] (!%p156_p10), %vm206_vm0, %v546_v3  ;;  %s184_s5 = scalar_lea.vmem (!%p156_p10), [#allocation6], %s389_s4  ;;  %s393_s7 = sshll.u32 (!%p156_p10), %s534_s12, 7 }
  0x11   : > { %v242_v13 = vand.u32 (!%p156_p10), 127, %v241_v12  ;;  %s299_s6 = sshll.u32 (!%p156_p10), %s184_s5, 4  ;;  %s642_s18 = scalar_lea.hbm (!%p156_p10), %s689_s2, %s393_s7  ;;  %s637_s6 = int_to_ptr.vmem [resolvable:$true] %s299_s6 }
  0x12   : > { %s286_s20 = scalar_lea.sflag (!%p156_p10), [#allocation7], %s182_s3 }
  0x16   : > { %s187_s23 = scalar_select %p186_p11, %s534_s12, 1  ;;  %v219_v5 = vld [vmem:[#allocation2] sm:$0xff]  ;;  %v266_v33 = vld [vmem:[#allocation5] sm:$0xff] }
  0x17   : > { %v221_v19 = vld [vmem:[#allocation3] sm:$0xff]  ;;  %v245_v23 = vld [vmem:[#allocation4] sm:$0xff]  ;;  %s547_s12 = smov [#allocation6]  }
  0x18   : > { %s390_s24 = sshll.u32 %s187_s23, 3  ;;  %s464_s23 = scalar_lea.vmem %s637_s6, 128 }
  0x19   : > { %s192_s27 = scalar_lea.vmem %s687_s0, %s390_s24  ;;  %s198_s30 = scalar_lea.vmem %s688_s1, %s390_s24 }
  0x1a   : > { %v215_v1 = vld [vmem:[%s192_s27] sm:$0xff]  ;;  %p465_p12 = scmp.ne.s32.totalorder %s637_s6, %s464_s23  ;;  %s468_s24 = sshll.u32 %s547_s12, 4  ;;  %s469_s24 = int_to_ptr.vmem [resolvable:$false] %s468_s24 }
  0x1b   : > { %217 = vmax.xlane.f32.xlu0 %v215_v1  ;;  %v216_v4 = vld [vmem:[%s198_s30] sm:$0xff]  ;;  %s470_s25 = scalar_lea.vmem %s469_s24, 256  ;;  %p471_p1 = scmp.lt.s32.totalorder %s637_s6, %s469_s24 }
  0x1c   : > { %247 = vperm.xlu1 %457, %v216_v4   ;;  %vm258_vm2 = vcmp.ge.s32.totalorder %v216_v4, 0  ;;  %p466_p13 = pnand %p465_p12, %p603_p4  ;;  %p472_p2 = scmp.lt.s32.totalorder %s470_s25, %s464_s23 }
  0x1e   : > { %p467_p0 = pneg %p466_p13  ;;  %p473_p3 = por %p472_p2, %p471_p1 }
  0x20   : > { %p474_p5 = pnand %p473_p3, %p467_p0 }
  0x9b   : > { %v248_v14 = vpop.permute.xlu1 %247 }
  0x9c   : > { %vm249_vm1 = vcmp.eq.s32.totalorder %v242_v13, %v248_v14 }
  0x9d   : > { %v250_v16 = vsel %vm249_vm1, %v215_v1, 0.0 }
  0xa8   : > { %v218_v6 = vpop.xlane.xlu0 %217 }
  0xa9   : > { %v220_v7 = vmax.f32 %v219_v5, %v218_v6 }
  0xab   : > { %v222_v8 = vsub.f32 %v219_v5, %v220_v7  ;;  %239 = vst.msk [vmem:[#allocation2] sm:$0xff] %vm206_vm0, %v220_v7  ;;  %228 = vperm.xlu0 %456, %v220_v7  }
  0xad   : > { %v223_v17 = vmul.f32 1.442695, %v222_v8 }
  0xb2   : > { %v259_v29 = vld [vmem:[#allocation2] sm:$0xff] }
 0x12a   : > { %v229_v9 = vpop.permute.xlu0 %228 }
 0x12b   : > { %v231_v10 = vsub.f32 %v215_v1, %v229_v9 }
 0x12d   : > { %v232_v11 = vmul.f32 1.442695, %v231_v10 }
 0x12f   : > { %458 = vpow2.f32 %v232_v11 }
 0x130   : > { %460 = vpow2.f32 %v223_v17 }
 0x139   : > { %v459_v15 = vpop.eup %458 }
 0x13a   : > { %234 = vadd.xlane.f32.xlu1 %v459_v15  ;;  %v461_v18 = vpop.eup %460 }
 0x13b   : > { %v225_v20 = vmul.f32 %v461_v18, %v221_v19 }
 0x13e   : > { %251 = vadd.xlane.f32.xlu1 %v250_v16 }
 0x1c7   : > { %v235_v21 = vpop.xlane.xlu1 %234 }
 0x1c8   : > { %v236_v22 = vadd.f32 %v235_v21, %v225_v20 }
 0x1ca   : > { %238 = vst.msk [vmem:[#allocation3] sm:$0xff] %vm206_vm0, %v236_v22 }
 0x1cb   : > { %v252_v24 = vpop.xlane.xlu1 %251 }
 0x1cc   : > { %v253_v25 = vadd.f32 %v252_v24, %v245_v23 }
 0x1ce   : > { %254 = vst.msk [vmem:[#allocation4] sm:$0xff] %vm206_vm0, %v253_v25 }
 0x1d1   : > { %v260_v26 = vld [vmem:[#allocation3] sm:$0xff] }
 0x1d2   : > { %462 = vlog2.f32 %v260_v26 }
 0x1d5   : > { %v264_v30 = vld [vmem:[#allocation4] sm:$0xff] }
 0x1dc   : > { %v463_v27 = vpop.eup %462 }
 0x1dd   : > { %v262_v28 = vmul.f32 0.6931472, %v463_v27 }
 0x1df   : > { %v263_v31 = vadd.f32 %v262_v28, %v259_v29 }
 0x1e1   : > { %v265_v32 = vsub.f32 %v263_v31, %v264_v30 }
 0x1e3   : > { %v267_v34 = vsel %vm258_vm2, %v265_v32, 0.0 }
 0x1e4   : > { %v268_v35 = vadd.f32 %v267_v34, %v266_v33 }
 0x1e6   : > { %269 = vst.msk [vmem:[#allocation5] sm:$0xff] %vm206_vm0, %v268_v35 }
 0x1ed   : > { %v272_v36 = vld [vmem:[#allocation5] sm:$0xff] }
 0x1ee   : > { %v273_v37 = vsel %vm206_vm0, %v272_v36, 0.0 }
 0x1ef   : > { %274 = vadd.xlane.f32.xlu1 %v273_v37 }
 0x27c   : > { %v275_v38 = vpop.xlane.xlu1 %274 }
 0x27d   : > { %v276_v39 = vrot.slane %v275_v38, 4 }
 0x27f   : > { %v277_v40 = vadd.f32 %v276_v39, %v275_v38 }
 0x281   : > { %v278_v41 = vrot.slane %v277_v40, 2 }
 0x283   : > { %v279_v42 = vadd.f32 %v278_v41, %v277_v40 }
 0x285   : > { %v280_v43 = vrot.slane %v279_v42, 1 }
 0x287   : > { %v281_v44 = vadd.f32 %v280_v43, %v279_v42 }
 0x289   : > { %396 = vpush %v281_v44 }
 0x2ba   : > { %s397_s8 = spop %396 }
 0x2bb   : > { %v283_v45 = vstv %s397_s8 }
 0x2bc   : > { %284 = vst [vmem:[%s184_s5] sm:$0xff] %v283_v45 }
 0x2bd   : > { %477 = shalt.err (!%p474_p5)
}
 0x2be   : > { %s478_s26 = scalar_lea.hbm %s642_s18, 128  ;;  %s482_s29 = scalar_lea.hbm %s689_s2, 256 }
 0x2bf   : > { %p479_p6 = scmp.ne.s32.totalorder %s642_s18, %s478_s26  ;;  %p483_p10 = scmp.lt.u32.totalorder %s642_s18, %s689_s2 }
 0x2c0   : > { %p484_p11 = scmp.lt.u32.totalorder %s482_s29, %s478_s26  ;;  %p486_p13 = scmp.lt.u32.totalorder %s478_s26, %s642_s18 }
 0x2c1   : > { %p480_p7 = pnand %p479_p6, %p603_p4 }
 0x2c2   : > { %p485_p12 = por %p484_p11, %p483_p10 }
 0x2c3   : > { %p481_p9 = pneg %p480_p7 }
 0x2c4   : > { %p487_p0 = por %p486_p13, %p485_p12 }
 0x2c6   : > { %p488_p1 = pnand %p487_p0, %p481_p9 }
 0x2c8   : > { %491 = shalt.err (!%p488_p1)
}
 0x2c9   : > { %398 = dma.vmem_to_hbm [thread:$0]  (%p603_p4), %s637_s6, 128, %s642_s18, %s286_s20  }
 0x2ca PF: > { %p404_p2 = scmp.ge.s32.totalorder %s542_s14, 2  ;;  %s311_s4 = sand.u32 1, %s522_s9  }
 0x2cb   : > { %s312_s5 = scalar_lea.sflag [#allocation7], %s311_s4 }
 0x2cc   : > { %p401_p3 = pnand %p404_p2, %p610_p8 }
 0x2ce   : > { %517 = dma.done.wait (!%p401_p3), %s312_s5, 128  }
 0x2cf   : > { %519 = vsyncadd (!%p401_p3), %s312_s5, 4294967168  ;;  %s15_s14 = sadd.s32 1, %s542_s14   ;;  %s692_s9 = smov %s526_s10 }
 0x2d0   : > { %p12_p5 = scmp.ge.s32.totalorder %s15_s14, 4   ;;  %s693_s10 = smov %s530_s11 }
 0x2d1   : > { %s694_s11 = smov %s616_s22  ;;  %s695_s12 = smov %s538_s13 }
 0x2d2   : > { %s696_s13 = smov %s698_s17  ;;  %14 = sbr.rel (!%p12_p5) target bundleno = 4 (0x4), region = 82 }
 0x2d9   :  { %317 = vsyncpa [#allocation7], 1 }
 0x2da   :  { %319 = vsyncpa [#allocation7 + $0x1], 1 }

</bundles_post_ra>
